<compile_context>
chip_gen: v5e
topology: v5e:2x2
jax: 0.10.0
libtpu: 0.0.40
codegen_flags: <defaults>
</compile_context>

<pallas_src>
import functools

import jax
import jax.numpy as jnp
from jax.experimental import pallas as pl
from jax.experimental.pallas import tpu as pltpu


_MAX_BATCH_TILE = 256   # multiple of 8; fine for v5e's smaller datapath too
_MAX_K_TILE = 512       # K-tile for the lin1 reduction (multiple of 128)


def _round_up(x, m):
    return (x + m - 1) // m * m


# ---------------------------------------------------------------------------
# Pallas kernel: full MLP head of HetEncoder.
# grid = (batch_tiles, k_tiles); k (input-feature reduction) is last / fastest.
# ---------------------------------------------------------------------------
def _het_encoder_mlp_kernel(inp_ref,
                            w1_ref, b1_ref,
                            w1b_ref, b1b_ref,
                            w23_ref, b23_ref,
                            out_ref, acc_ref):
    k = pl.program_id(1)

    @pl.when(k == 0)
    def _():
        acc_ref[...] = jnp.zeros_like(acc_ref)

    # lin1 partial product for this K tile (bf16 MXU, f32 accumulate)
    acc_ref[...] += jnp.dot(inp_ref[...], w1_ref[...],
                            preferred_element_type=jnp.float32)

    @pl.when(k == pl.num_programs(1) - 1)
    def _():
        # ReLU(lin1)
        h = jnp.maximum(acc_ref[...] + b1_ref[...], 0.0)
        # Tanh(lin1b)
        h2 = jnp.dot(h.astype(jnp.bfloat16), w1b_ref[...],
                     preferred_element_type=jnp.float32)
        h2 = jnp.tanh(h2 + b1b_ref[...])
        # fused lin2|lin3 head, lane-padded -> unmasked lane-dense store
        out = jnp.dot(h2.astype(jnp.bfloat16), w23_ref[...],
                      preferred_element_type=jnp.float32)
        out_ref[...] = out + b23_ref[...]


def _het_encoder_mlp(inp, w1, b1, w1b, b1b, w23, b23, *, tk):
    n, d = inp.shape              # d already padded to a multiple of tk
    h1 = w1.shape[1]              # 256
    h2 = w1b.shape[1]             # 128
    hp = w23.shape[1]             # lane-padded 2*latent_dim

    tn = n if n <= _MAX_BATCH_TILE else _MAX_BATCH_TILE
    grid = (pl.cdiv(n, tn), d // tk)

    def resident(arr):
        shape = arr.shape
        return pl.BlockSpec(shape, lambda i, k: (0,) * len(shape))

    in_specs = [
        pl.BlockSpec((tn, tk), lambda i, k: (i, k)),   # activations (batch, K)
        pl.BlockSpec((tk, h1), lambda i, k: (k, 0)),   # lin1 weight K-tiles
        resident(b1),
        resident(w1b), resident(b1b),
        resident(w23), resident(b23),
    ]
    out_specs = pl.BlockSpec((tn, hp), lambda i, k: (i, 0))

    # Right-sized VMEM request: double-buffered streamed blocks + resident
    # weights (conservatively x2 for their buffers) + accumulator + headroom.
    resident_bytes = 2 * (b1.size * 4 + w1b.size * 2 + b1b.size * 4
                          + w23.size * 2 + b23.size * 4)
    stream_bytes = 2 * (tn * tk * 2 + tk * h1 * 2 + tn * hp * 4)
    scratch_bytes = tn * h1 * 4
    vmem_limit = int(min(resident_bytes + stream_bytes + scratch_bytes
                         + (4 << 20), 32 << 20))

    cost = pl.CostEstimate(
        flops=2 * n * (d * h1 + h1 * h2 + h2 * hp),
        transcendentals=n * h2,
        bytes_accessed=(n * d * 2 + w1.size * 2 + w1b.size * 2 + w23.size * 2
                        + (b1.size + b1b.size + b23.size) * 4 + n * hp * 4),
    )

    return pl.pallas_call(
        _het_encoder_mlp_kernel,
        out_shape=jax.ShapeDtypeStruct((n, hp), jnp.float32),
        grid=grid,
        in_specs=in_specs,
        out_specs=out_specs,
        scratch_shapes=[pltpu.VMEM((tn, h1), jnp.float32)],
        compiler_params=pltpu.CompilerParams(
            dimension_semantics=("parallel", "arbitrary"),
            vmem_limit_bytes=vmem_limit),
        cost_estimate=cost,
    )(inp, w1, b1, w1b, b1b, w23, b23)


# ---------------------------------------------------------------------------
# Glue: AvgPool2d(2, stride=2) applied `down_sample` times + Flatten.
# ---------------------------------------------------------------------------
def _avg_pool_2x2(x):
    # x: (N, C, H, W) -> (N, C, H//2, W//2); exact nn.AvgPool2d(2, 2) semantics
    n, c, h, w = x.shape
    return x.reshape(n, c, h // 2, 2, w // 2, 2).mean(axis=(3, 5))


@functools.partial(jax.jit, static_argnames=("down_sample", "latent_dim"))
def het_encoder_forward(x, ctf, params, *, down_sample, latent_dim):
    # ctf is accepted but unused — exactly like the reference forward().
    del ctf
    (w1, b1, w1b, b1b, w2, b2, w3, b3) = params

    inp = x
    for _ in range(down_sample):
        inp = _avg_pool_2x2(inp)
    inp = inp.reshape(inp.shape[0], -1)            # nn.Flatten()
    # TODO(synk): the (tiny, linear) pooling+flatten stays in XLA; it could be
    # folded into w1 since AvgPool is linear, at the cost of 4**down_sample x
    # more lin1 FLOPs.

    # Pad the input-feature dim so every K block is full/unmasked.
    d_in = inp.shape[1]
    d_pad = _round_up(d_in, 128)
    tk = min(d_pad, _MAX_K_TILE)
    d_pad = _round_up(d_pad, tk)

    inp_bf = jnp.pad(inp, ((0, 0), (0, d_pad - d_in))).astype(jnp.bfloat16)
    w1_bf = jnp.pad(w1, ((0, d_pad - d_in), (0, 0))).astype(jnp.bfloat16)
    w1b_bf = w1b.astype(jnp.bfloat16)

    # Fuse + lane-pad the two latent heads: cols [0:L] = lin2, [L:2L] = lin3.
    hp = max(128, _round_up(2 * latent_dim, 128))
    pad = hp - 2 * latent_dim
    w23 = jnp.pad(jnp.concatenate([w2, w3], axis=1),
                  ((0, 0), (0, pad))).astype(jnp.bfloat16)
    b23 = jnp.pad(jnp.concatenate([b2, b3], axis=1), ((0, 0), (0, pad)))

    out = _het_encoder_mlp(inp_bf, w1_bf, b1, w1b_bf, b1b, w23, b23, tk=tk)
    x2 = out[:, :latent_dim]                       # lin2 output
    x3 = out[:, latent_dim:2 * latent_dim]         # lin3 output
    return x2, x3


# ---------------------------------------------------------------------------
# Deterministic parameter construction (synthetic, no checkpoint).
# ---------------------------------------------------------------------------
def init_params(key, box_size, latent_dim, down_sample):
    d_in = int((box_size / 2 ** down_sample) ** 2)
    keys = jax.random.split(key, 8)

    def linear(kw, kb, fan_in, fan_out):
        # weights stored (in, out) so the kernel does x @ W + b
        w = jax.random.normal(kw, (fan_in, fan_out), jnp.float32) * 0.05
        b = jax.random.normal(kb, (1, fan_out), jnp.float32) * 0.01
        return w, b

    w1, b1 = linear(keys[0], keys[1], d_in, 256)         # lin1
    w1b, b1b = linear(keys[2], keys[3], 256, 128)        # lin1b
    w2, b2 = linear(keys[4], keys[5], 128, latent_dim)   # lin2
    w3, b3 = linear(keys[6], keys[7], 128, latent_dim)   # lin3
    return (w1, b1, w1b, b1b, w2, b2, w3, b3)


# ---------------------------------------------------------------------------
# Pure-JAX reference (mirrors the PyTorch module, with the same bf16 matmul /
# f32-accumulate arithmetic as the kernel) for a correctness check.
# ---------------------------------------------------------------------------
def het_encoder_ref(x, ctf, params, down_sample):
    del ctf
    (w1, b1, w1b, b1b, w2, b2, w3, b3) = params
    inp = x
    for _ in range(down_sample):
        inp = _avg_pool_2x2(inp)
    inp = inp.reshape(inp.shape[0], -1)

    def mm(a, w):
        return jnp.dot(a.astype(jnp.bfloat16), w.astype(jnp.bfloat16),
                       preferred_element_type=jnp.float32)

    h = jnp.maximum(mm(inp, w1) + b1, 0.0)
    h2 = jnp.tanh(mm(h, w1b) + b1b)
    x2 = mm(h2, w2) + b2
    x3 = mm(h2, w3) + b3
    return x2, x3


if __name__ == "__main__":
    box_size = 16
    latent_dim = 8
    down_sample = 1
    batch = 2

    key = jax.random.PRNGKey(0)
    k_params, k_x, k_ctf = jax.random.split(key, 3)

    params = init_params(k_params, box_size, latent_dim, down_sample)
    x = jax.random.normal(k_x, (batch, 1, box_size, box_size), jnp.float32)
    ctf = jax.random.normal(k_ctf, (batch, 1, box_size, box_size), jnp.float32)

    x2, x3 = het_encoder_forward(x, ctf, params,
                                 down_sample=down_sample, latent_dim=latent_dim)
    jax.block_until_ready((x2, x3))

    r2, r3 = het_encoder_ref(x, ctf, params, down_sample)
    assert x2.shape == (batch, latent_dim) and x3.shape == (batch, latent_dim)
    assert jnp.allclose(x2, r2, atol=5e-3, rtol=5e-3)
    assert jnp.allclose(x3, r3, atol=5e-3, rtol=5e-3)

    print("KERNEL_OK")
</pallas_src>

<mosaic_0001>
module attributes {stable_mosaic.version = 11 : i64} {
  func.func @_het_encoder_mlp_kernel(%arg0: i32, %arg1: i32, %arg2: memref<2x128xbf16, #tpu.memory_space<vmem>>, %arg3: memref<128x256xbf16, #tpu.memory_space<vmem>>, %arg4: memref<1x256xf32, #tpu.memory_space<vmem>>, %arg5: memref<256x128xbf16, #tpu.memory_space<vmem>>, %arg6: memref<1x128xf32, #tpu.memory_space<vmem>>, %arg7: memref<128x128xbf16, #tpu.memory_space<vmem>>, %arg8: memref<1x128xf32, #tpu.memory_space<vmem>>, %arg9: memref<2x128xf32, #tpu.memory_space<vmem>>, %arg10: memref<2x256xf32, #tpu.memory_space<vmem>>) attributes {dimension_semantics = [#tpu.dimension_semantics<parallel>, #tpu.dimension_semantics<arbitrary>], iteration_bounds = array<i64: 1, 1>, scalar_prefetch = 0 : i64, scratch_operands = 1 : i64, tpu.core_type = #tpu.core_type<tc>, window_params = [{transform_indices = @transform_0, window_bounds = array<i64: 2, 128>}, {transform_indices = @transform_1, window_bounds = array<i64: 128, 256>}, {pipeline_mode = #tpu.pipeline_mode<synchronous>, transform_indices = @transform_2, window_bounds = array<i64: 1, 256>}, {pipeline_mode = #tpu.pipeline_mode<synchronous>, transform_indices = @transform_3, window_bounds = array<i64: 256, 128>}, {pipeline_mode = #tpu.pipeline_mode<synchronous>, transform_indices = @transform_4, window_bounds = array<i64: 1, 128>}, {pipeline_mode = #tpu.pipeline_mode<synchronous>, transform_indices = @transform_5, window_bounds = array<i64: 128, 128>}, {pipeline_mode = #tpu.pipeline_mode<synchronous>, transform_indices = @transform_6, window_bounds = array<i64: 1, 128>}, {transform_indices = @transform_7, window_bounds = array<i64: 2, 128>}]} {
    %c0_i32 = arith.constant 0 : i32
    %0 = arith.cmpi eq, %arg1, %c0_i32 : i32
    %1 = arith.extui %0 : i1 to i32
    %c0_i32_0 = arith.constant 0 : i32
    %2 = arith.cmpi ne, %1, %c0_i32_0 : i32
    scf.if %2 {
      %cst_10 = arith.constant 0.000000e+00 : f32
      %12 = vector.broadcast %cst_10 : f32 to vector<2x256xf32>
      %c0_11 = arith.constant 0 : index
      %c0_12 = arith.constant 0 : index
      %13 = vector.load %arg10[%c0_11, %c0_12] : memref<2x256xf32, #tpu.memory_space<vmem>>, vector<2x256xf32>
      tpu.vector_store %arg10[%c0_11, %c0_12], %12 {strides = array<i32>} : memref<2x256xf32, #tpu.memory_space<vmem>>, vector<2x256xf32>,
    } else {
    }
    %c0 = arith.constant 0 : index
    %c0_1 = arith.constant 0 : index
    %3 = vector.load %arg10[%c0, %c0_1] : memref<2x256xf32, #tpu.memory_space<vmem>>, vector<2x256xf32>
    %c0_2 = arith.constant 0 : index
    %c0_3 = arith.constant 0 : index
    %4 = vector.load %arg2[%c0_2, %c0_3] : memref<2x128xbf16, #tpu.memory_space<vmem>>, vector<2x128xbf16>
    %c0_4 = arith.constant 0 : index
    %c0_5 = arith.constant 0 : index
    %5 = vector.load %arg3[%c0_4, %c0_5] : memref<128x256xbf16, #tpu.memory_space<vmem>>, vector<128x256xbf16>
    %cst = arith.constant dense<0.000000e+00> : vector<2x256xf32>
    %6 = tpu.matmul %4, %5, %cst {dimension_numbers = #tpu.dot_dimension_numbers<[1], [0], [0], [1], [0, 0, 1, 1], [], []>} : vector<2x128xbf16>, vector<128x256xbf16>, vector<2x256xf32> -> vector<2x256xf32>
    %7 = arith.addf %3, %6 : vector<2x256xf32>
    %c0_6 = arith.constant 0 : index
    %c0_7 = arith.constant 0 : index
    %8 = vector.load %arg10[%c0_6, %c0_7] : memref<2x256xf32, #tpu.memory_space<vmem>>, vector<2x256xf32>
    tpu.vector_store %arg10[%c0_6, %c0_7], %7 {strides = array<i32>} : memref<2x256xf32, #tpu.memory_space<vmem>>, vector<2x256xf32>,
    %c0_i32_8 = arith.constant 0 : i32
    %9 = arith.cmpi eq, %arg1, %c0_i32_8 : i32
    %10 = arith.extui %9 : i1 to i32
    %c0_i32_9 = arith.constant 0 : i32
    %11 = arith.cmpi ne, %10, %c0_i32_9 : i32
    scf.if %11 {
      %c0_10 = arith.constant 0 : index
      %c0_11 = arith.constant 0 : index
      %12 = vector.load %arg10[%c0_10, %c0_11] : memref<2x256xf32, #tpu.memory_space<vmem>>, vector<2x256xf32>
      %c0_12 = arith.constant 0 : index
      %c0_13 = arith.constant 0 : index
      %13 = vector.load %arg4[%c0_12, %c0_13] : memref<1x256xf32, #tpu.memory_space<vmem>>, vector<1x256xf32>
      %14 = vector.broadcast %13 : vector<1x256xf32> to vector<2x256xf32>
      %15 = arith.addf %12, %14 : vector<2x256xf32>
      %cst_14 = arith.constant 0.000000e+00 : f32
      %16 = vector.broadcast %cst_14 : f32 to vector<2x256xf32>
      %17 = arith.maximumf %15, %16 : vector<2x256xf32>
      %18 = arith.truncf %17 : vector<2x256xf32> to vector<2x256xbf16>
      %c0_15 = arith.constant 0 : index
      %c0_16 = arith.constant 0 : index
      %19 = vector.load %arg5[%c0_15, %c0_16] : memref<256x128xbf16, #tpu.memory_space<vmem>>, vector<256x128xbf16>
      %cst_17 = arith.constant dense<0.000000e+00> : vector<2x128xf32>
      %20 = tpu.matmul %18, %19, %cst_17 {dimension_numbers = #tpu.dot_dimension_numbers<[1], [0], [0], [1], [0, 0, 1, 1], [], []>} : vector<2x256xbf16>, vector<256x128xbf16>, vector<2x128xf32> -> vector<2x128xf32>
      %c0_18 = arith.constant 0 : index
      %c0_19 = arith.constant 0 : index
      %21 = vector.load %arg6[%c0_18, %c0_19] : memref<1x128xf32, #tpu.memory_space<vmem>>, vector<1x128xf32>
      %22 = vector.broadcast %21 : vector<1x128xf32> to vector<2x128xf32>
      %23 = arith.addf %20, %22 : vector<2x128xf32>
      %24 = math.tanh %23 : vector<2x128xf32>
      %25 = arith.truncf %24 : vector<2x128xf32> to vector<2x128xbf16>
      %c0_20 = arith.constant 0 : index
      %c0_21 = arith.constant 0 : index
      %26 = vector.load %arg7[%c0_20, %c0_21] : memref<128x128xbf16, #tpu.memory_space<vmem>>, vector<128x128xbf16>
      %cst_22 = arith.constant dense<0.000000e+00> : vector<2x128xf32>
      %27 = tpu.matmul %25, %26, %cst_22 {dimension_numbers = #tpu.dot_dimension_numbers<[1], [0], [0], [1], [0, 0, 1, 1], [], []>} : vector<2x128xbf16>, vector<128x128xbf16>, vector<2x128xf32> -> vector<2x128xf32>
      %c0_23 = arith.constant 0 : index
      %c0_24 = arith.constant 0 : index
      %28 = vector.load %arg8[%c0_23, %c0_24] : memref<1x128xf32, #tpu.memory_space<vmem>>, vector<1x128xf32>
      %29 = vector.broadcast %28 : vector<1x128xf32> to vector<2x128xf32>
      %30 = arith.addf %27, %29 : vector<2x128xf32>
      %c0_25 = arith.constant 0 : index
      %c0_26 = arith.constant 0 : index
      %31 = vector.load %arg9[%c0_25, %c0_26] : memref<2x128xf32, #tpu.memory_space<vmem>>, vector<2x128xf32>
      tpu.vector_store %arg9[%c0_25, %c0_26], %30 {strides = array<i32>} : memref<2x128xf32, #tpu.memory_space<vmem>>, vector<2x128xf32>,
    } else {
    }
    return
  }
  func.func @transform_0(%arg0: i32, %arg1: i32) -> (i32, i32) {
    %c0_i32 = arith.constant 0 : i32
    return %arg0, %arg1 : i32, i32
  }
  func.func @transform_1(%arg0: i32, %arg1: i32) -> (i32, i32) {
    %c0_i32 = arith.constant 0 : i32
    %c0_i32_0 = arith.constant 0 : i32
    return %arg1, %c0_i32 : i32, i32
  }
  func.func @transform_2(%arg0: i32, %arg1: i32) -> (i32, i32) {
    %c0_i32 = arith.constant 0 : i32
    %c0_i32_0 = arith.constant 0 : i32
    %c0_i32_1 = arith.constant 0 : i32
    return %c0_i32, %c0_i32_0 : i32, i32
  }
  func.func @transform_3(%arg0: i32, %arg1: i32) -> (i32, i32) {
    %c0_i32 = arith.constant 0 : i32
    %c0_i32_0 = arith.constant 0 : i32
    %c0_i32_1 = arith.constant 0 : i32
    return %c0_i32, %c0_i32_0 : i32, i32
  }
  func.func @transform_4(%arg0: i32, %arg1: i32) -> (i32, i32) {
    %c0_i32 = arith.constant 0 : i32
    %c0_i32_0 = arith.constant 0 : i32
    %c0_i32_1 = arith.constant 0 : i32
    return %c0_i32, %c0_i32_0 : i32, i32
  }
  func.func @transform_5(%arg0: i32, %arg1: i32) -> (i32, i32) {
    %c0_i32 = arith.constant 0 : i32
    %c0_i32_0 = arith.constant 0 : i32
    %c0_i32_1 = arith.constant 0 : i32
    return %c0_i32, %c0_i32_0 : i32, i32
  }
  func.func @transform_6(%arg0: i32, %arg1: i32) -> (i32, i32) {
    %c0_i32 = arith.constant 0 : i32
    %c0_i32_0 = arith.constant 0 : i32
    %c0_i32_1 = arith.constant 0 : i32
    return %c0_i32, %c0_i32_0 : i32, i32
  }
  func.func @transform_7(%arg0: i32, %arg1: i32) -> (i32, i32) {
    %c0_i32 = arith.constant 0 : i32
    %c0_i32_0 = arith.constant 0 : i32
    return %arg0, %c0_i32 : i32, i32
  }
}

</mosaic_0001>

<bundles_post_ra>
// kernel: het_encoder_forward.1
= control target key start
LH: loop header
LB: loop body
LE: loop exit
PB: predicated region body
PF: predicated region fallthrough
CT: control target
= control target key end

     0   :  { %v635_v51 = vmov 0.0   ;;  %vm158_vm0 = vcmask 1041408   ;;  %s861_s1 = inlined_call_operand.vmem [shape: bf16[128,256], index: 1, kind: input, shape index: {}]   ;;  %s862_s3 = inlined_call_operand.vmem [shape: bf16[256,128], index: 3, kind: input, shape index: {}]   ;;  %s863_s0 = inlined_call_operand.vmem [shape: bf16[2,128], index: 0, kind: input, shape index: {}]   ;;  %s864_s4 = inlined_call_operand.vmem [shape: f32[1,128], index: 4, kind: input, shape index: {}]   ;;  %s865_s5 = inlined_call_operand.vmem [shape: bf16[128,128], index: 5, kind: input, shape index: {}]   ;;  %s866_s2 = inlined_call_operand.vmem [shape: f32[1,256], index: 2, kind: input, shape index: {}]   ;;  %s867_s6 = inlined_call_operand.vmem [shape: f32[1,128], index: 6, kind: input, shape index: {}]   ;;  %s868_s7 = inlined_call_operand.vmem [shape: f32[2,128], index: 7, kind: output, shape index: {}]  }
   0x1   :  { %v488_v0 = vld [vmem:[%s861_s1 + $0x70] sm:$0xf]  ;;  %v605_v1 = vld [vmem:[%s861_s1 + $0x74] sm:$0xf0]  ;;  %v604_v2 = vld [vmem:[%s861_s1 + $0x74] sm:$0xf] }
   0x2   :  { %v489_v3 = vor.u32 %v605_v1, %v488_v0  ;;  %v490_v4 = vld [vmem:[%s861_s1 + $0x78] sm:$0xf0]  ;;  %v480_v5 = vld [vmem:[%s861_s1 + $0x60] sm:$0xf]  ;;  %v603_v6 = vld [vmem:[%s861_s1 + $0x64] sm:$0xf0] }
   0x3   :  { %v493_v7 = vor.u32 %v604_v2, %v490_v4  ;;  %v602_v8 = vld [vmem:[%s861_s1 + $0x64] sm:$0xf]  ;;  %v482_v9 = vld [vmem:[%s861_s1 + $0x68] sm:$0xf0]  ;;  %v481_v10 = vor.u32 %v603_v6, %v480_v5  ;;  %v472_v12 = vld [vmem:[%s861_s1 + $0x50] sm:$0xf] }
   0x4   :  { %129 = vmatpush.bf16.msra.mxu0 %v489_v3  ;;  %v485_v11 = vor.u32 %v602_v8, %v482_v9  ;;  %v601_v13 = vld [vmem:[%s861_s1 + $0x54] sm:$0xf0]  ;;  %v600_v14 = vld [vmem:[%s861_s1 + $0x54] sm:$0xf]  ;;  %v474_v15 = vld [vmem:[%s861_s1 + $0x58] sm:$0xf0] }
   0x5   :  { %142 = vmatpush.bf16.msra.mxu1 %v493_v7  ;;  %v473_v16 = vor.u32 %v601_v13, %v472_v12  ;;  %v477_v17 = vor.u32 %v600_v14, %v474_v15  ;;  %v464_v18 = vld [vmem:[%s861_s1 + $0x40] sm:$0xf]  ;;  %v599_v19 = vld [vmem:[%s861_s1 + $0x44] sm:$0xf0]  ;;  %v598_v20 = vld [vmem:[%s861_s1 + $0x44] sm:$0xf] }
   0x6   :  { %v466_v21 = vld [vmem:[%s861_s1 + $0x48] sm:$0xf0]  ;;  %v465_v22 = vor.u32 %v599_v19, %v464_v18  ;;  %v613_v23 = vld [vmem:[%s862_s3 + $0x38] sm:$0xff]  ;;  %v456_v26 = vld [vmem:[%s861_s1 + $0x30] sm:$0xf] }
   0x7   :  { %v621_v24 = vld [vmem:[%s862_s3 + $0x78] sm:$0xff]  ;;  %v469_v25 = vor.u32 %v598_v20, %v466_v21  ;;  %v596_v28 = vld [vmem:[%s861_s1 + $0x34] sm:$0xf]  ;;  %316 = vmatpush.bf16.msra.mxu2 %v613_v23  ;;  %v448_v32 = vld [vmem:[%s861_s1 + $0x20] sm:$0xf] }
   0x8   :  { %130 = vmatpush.bf16.msra.mxu0 %v481_v10  ;;  %v597_v27 = vld [vmem:[%s861_s1 + $0x34] sm:$0xf0]  ;;  %v458_v29 = vld [vmem:[%s861_s1 + $0x38] sm:$0xf0]  ;;  %329 = vmatpush.bf16.msra.mxu3 %v621_v24  ;;  %v595_v33 = vld [vmem:[%s861_s1 + $0x24] sm:$0xf0] }
   0x9   :  { %143 = vmatpush.bf16.msra.mxu1 %v485_v11  ;;  %v457_v30 = vor.u32 %v597_v27, %v456_v26  ;;  %v461_v31 = vor.u32 %v596_v28, %v458_v29  ;;  %v594_v34 = vld [vmem:[%s861_s1 + $0x24] sm:$0xf]  ;;  %v450_v35 = vld [vmem:[%s861_s1 + $0x28] sm:$0xf0]  ;;  %v449_v36 = vor.u32 %v595_v33, %v448_v32  ;;  %v440_v38 = vld [vmem:[%s861_s1 + $0x10] sm:$0xf] }
   0xa   :  { %v453_v37 = vor.u32 %v594_v34, %v450_v35  ;;  %v593_v39 = vld [vmem:[%s861_s1 + $0x14] sm:$0xf0]  ;;  %v592_v40 = vld [vmem:[%s861_s1 + $0x14] sm:$0xf]  ;;  %v442_v41 = vld [vmem:[%s861_s1 + $0x18] sm:$0xf0] }
   0xb   :  { %v441_v42 = vor.u32 %v593_v39, %v440_v38  ;;  %v445_v43 = vor.u32 %v592_v40, %v442_v41  ;;  %v432_v44 = vld [vmem:[%s861_s1] sm:$0xf]  ;;  %v591_v45 = vld [vmem:[%s861_s1 + $0x4] sm:$0xf0]  ;;  %v590_v46 = vld [vmem:[%s861_s1 + $0x4] sm:$0xf] }
   0xc   :  { %131 = vmatpush.bf16.msra.mxu0 %v473_v16  ;;  %v434_v47 = vld [vmem:[%s861_s1 + $0x8] sm:$0xf0]  ;;  %v433_v48 = vor.u32 %v591_v45, %v432_v44  ;;  %v32_v50 = vld [vmem:[%s863_s0] sm:$0x1]  ;;  %30 = vst [vmem:[#allocation2] sm:$0xf] %v635_v51 }
   0xd   :  { %144 = vmatpush.bf16.msra.mxu1 %v477_v17  ;;  %v437_v49 = vor.u32 %v590_v46, %v434_v47  ;;  %v612_v52 = vld [vmem:[%s862_s3 + $0x30] sm:$0xff]  ;;  %v611_v54 = vld [vmem:[%s862_s3 + $0x28] sm:$0xff]  ;;  %v610_v56 = vld [vmem:[%s862_s3 + $0x20] sm:$0xff] }
   0xe   :  { %v620_v53 = vld [vmem:[%s862_s3 + $0x70] sm:$0xff]  ;;  %317 = vmatpush.bf16.msra.mxu2 %v612_v52  ;;  %v619_v55 = vld [vmem:[%s862_s3 + $0x68] sm:$0xff]  ;;  %v618_v57 = vld [vmem:[%s862_s3 + $0x60] sm:$0xff] }
   0xf   :  { %330 = vmatpush.bf16.msra.mxu3 %v620_v53  ;;  %v609_v58 = vld [vmem:[%s862_s3 + $0x18] sm:$0xff]  ;;  %v608_v60 = vld [vmem:[%s862_s3 + $0x10] sm:$0xff]  ;;  %v607_v62 = vld [vmem:[%s862_s3 + $0x8] sm:$0xff] }
  0x10   :  { %132 = vmatpush.bf16.msra.mxu0 %v465_v22  ;;  %v617_v59 = vld [vmem:[%s862_s3 + $0x58] sm:$0xff]  ;;  %v616_v61 = vld [vmem:[%s862_s3 + $0x50] sm:$0xff]  ;;  %v615_v63 = vld [vmem:[%s862_s3 + $0x48] sm:$0xff] }
  0x11   :  { %145 = vmatpush.bf16.msra.mxu1 %v469_v25  ;;  %v606_v0 = vld [vmem:[%s862_s3] sm:$0xff]  ;;  %v629_v2 = vld [vmem:[%s865_s5 + $0x38] sm:$0xff]  ;;  %v628_v3 = vld [vmem:[%s865_s5 + $0x30] sm:$0xff] }
  0x12   :  { %318 = vmatpush.bf16.msra.mxu2 %v611_v54  ;;  %v614_v1 = vld [vmem:[%s862_s3 + $0x40] sm:$0xff]  ;;  %v627_v9 = vld [vmem:[%s865_s5 + $0x28] sm:$0xff]  ;;  %v625_v18 = vld [vmem:[%s865_s5 + $0x18] sm:$0xff] }
  0x13   :  { %331 = vmatpush.bf16.msra.mxu3 %v619_v55  ;;  %v167_v6 = vld [vmem:[%s866_s2] sm:$0x3]  ;;  %v31_v7 = vld [vmem:[#allocation2] sm:$0xf]  ;;  %v624_v27 = vld [vmem:[%s865_s5 + $0x10] sm:$0xff] }
  0x14   :  { %133 = vmatpush.bf16.msra.mxu0 %v457_v30  ;;  %v170_v11 = vperm.slane %v167_v6, 1  ;;  %v626_v13 = vld [vmem:[%s865_s5 + $0x20] sm:$0xff]  ;;  %v169_v14 = vperm.slane %v167_v6, 0  ;;  %v623_v28 = vld [vmem:[%s865_s5 + $0x8] sm:$0xff] }
  0x15   :  { %146 = vmatpush.bf16.msra.mxu1 %v461_v31  ;;  %v622_v29 = vld [vmem:[%s865_s5] sm:$0xff] }
  0x16   :  { %319 = vmatpush.bf16.msra.mxu2 %v610_v56  ;;  %v171_v15 = vrot.slane %v170_v11, 6  ;;  %v631_v30 = vld [vmem:[%s864_s4] ss:$0 sm:$0xff] }
  0x17   :  { %332 = vmatpush.bf16.msra.mxu3 %v618_v57  ;;  %v632_v39 = vld [vmem:[%s867_s6] ss:$0 sm:$0xff] }
  0x18   :  { %134 = vmatpush.bf16.msra.mxu0 %v449_v36  ;;  %v172_v19 = vsel %vm158_vm0, %v169_v14, %v171_v15 }
  0x19   :  { %147 = vmatpush.bf16.msra.mxu1 %v453_v37 }
  0x1a   :  { %320 = vmatpush.bf16.msra.mxu2 %v609_v58 }
  0x1b   :  { %333 = vmatpush.bf16.msra.mxu3 %v617_v59 }
  0x1c   :  { %135 = vmatpush.bf16.msra.mxu0 %v441_v42 }
  0x1d   :  { %148 = vmatpush.bf16.msra.mxu1 %v445_v43 }
  0x1e   :  { %321 = vmatpush.bf16.msra.mxu2 %v608_v60 }
  0x1f   :  { %334 = vmatpush.bf16.msra.mxu3 %v616_v61 }
  0x20   :  { %136 = vmatpush.bf16.msra.mxu0 %v433_v48 }
  0x21   :  { %149 = vmatpush.bf16.msra.mxu1 %v437_v49 }
  0x22   :  { %322 = vmatpush.bf16.msra.mxu2 %v607_v62 }
  0x23   :  { %137 = vmatmul.bf16.vlgmr.msra.gmra.mxu0 %v32_v50  ;;  %335 = vmatpush.bf16.msra.mxu3 %v615_v63 }
  0x24   :  { %150 = vmatmul.bf16.vlgmr.msra.gmra.mxu1 %v32_v50  ;;  %412 = vmatpush.bf16.msrb.mxu0 %v629_v2 }
  0x26   :  { %323 = vmatpush.bf16.msra.mxu2 %v606_v0 }
  0x27   :  { %336 = vmatpush.bf16.msra.mxu3 %v614_v1 }
  0x28   :  { %413 = vmatpush.bf16.msrb.mxu0 %v628_v3 }
  0x2c   :  { %414 = vmatpush.bf16.msrb.mxu0 %v627_v9 }
  0x30   :  { %415 = vmatpush.bf16.msrb.mxu0 %v626_v13 }
  0x34   :  { %416 = vmatpush.bf16.msrb.mxu0 %v625_v18 }
  0x38   :  { %417 = vmatpush.bf16.msrb.mxu0 %v624_v27 }
  0x3c   :  { %418 = vmatpush.bf16.msrb.mxu0 %v623_v28 }
  0x40   :  { %419 = vmatpush.bf16.msrb.mxu0 %v622_v29 }
  0xa0   :  { %v138_v4 = vpop.f32.mrf.mxu0 }
  0xa1   :  { %v151_v5 = vpop.f32.mrf.mxu1 }
  0xa2   :  { %v157_v8 = vrot.slane %v151_v5, 6 }
  0xa4   :  { %v159_v10 = vsel %vm158_vm0, %v138_v4, %v157_v8 }
  0xa5   :  { %v161_v12 = vadd.f32 %v159_v10, %v31_v7 }
  0xa7   :  { %162 = vst [vmem:[#allocation2] sm:$0xf] %v161_v12 }
  0xa8   :  { %v140_v16 = vpop.f32.mrf.mxu0 }
  0xa9   :  { %v153_v17 = vpop.f32.mrf.mxu1 }
  0xae   :  { %v166_v20 = vld [vmem:[#allocation2] sm:$0xf] }
  0xaf   :  { %v174_v21 = vadd.f32 %v172_v19, %v166_v20 }
  0xb1   :  { %v175_v22 = vmax.f32 %v174_v21, 0.0 }
  0xb3   :  { %177 = vst [vmem:[#allocation1] ss:$4 sm:$0xff] %v175_v22 }
  0xba   :  { %v178_v23 = vld.sshfl [vmem:[#allocation1] sm:$0xff pattern:$0x73625140]  ;;  %v179_v24 = vld.sshfl [vmem:[#allocation1 + $0x8] sm:$0xff pattern:$0x73625140] }
  0xbb   :  { %v182_v25 = vpack.c.bf16 %v178_v23, %v178_v23  ;;  %v183_v26 = vpack.c.bf16 %v179_v24, %v179_v24 }
  0xbd   :  { %324 = vmatmul.bf16.vlgmr.msra.gmra.mxu2 %v182_v25  ;;  %337 = vmatmul.bf16.vlgmr.msra.gmra.mxu3 %v183_v26 }
 0x140   :  { %v325_v31 = vpop.f32.mrf.mxu2  ;;  %v338_v32 = vpop.f32.mrf.mxu3 }
 0x141   :  { %v326_v33 = vadd.f32 %v631_v30, %v325_v31 }
 0x143   :  { %v339_v34 = vadd.f32 %v338_v32, %v326_v33 }
 0x145   :  { %633 = vtanh.f32 %v339_v34 }
 0x148   :  { %v327_v35 = vpop.f32.mrf.mxu2  ;;  %v340_v36 = vpop.f32.mrf.mxu3 }
 0x14b   :  { %v634_v37 = vpop.eup %633 }
 0x14c   :  { %v343_v38 = vpack.c.bf16 %v634_v37, %v634_v37 }
 0x14e   :  { %420 = vmatmul.bf16.vlgmr.msrb.gmra.mxu0 %v343_v38 }
 0x1cb   :  { %v421_v40 = vpop.f32.mrf.mxu0 }
 0x1cc   :  { %v422_v41 = vadd.f32 %v632_v39, %v421_v40 }
 0x1ce   :  { %425 = vst [vmem:[%s868_s7] sm:$0x3] %v422_v41 }
 0x1d3   :  { %v423_v42 = vpop.f32.mrf.mxu0 }

</bundles_post_ra>
